<compile_context>
chip_gen: v5e
topology: v5e:2x2
jax: 0.10.0
libtpu: 0.0.40
codegen_flags: <defaults>
</compile_context>

<pallas_src>
import jax
import jax.numpy as jnp
from jax.experimental import pallas as pl
from jax.experimental.pallas import tpu as pltpu


def _linear_relu_kernel(x_ref, w_ref, b_ref, q_ref):
    # q = relu(x @ W_t + b); W_t already [n_in, n_out] -> no in-kernel transpose.
    # (for large shapes on v6e/v7x: x_ref[...].astype(bf16) / w bf16, accumulate in f32)
    acc = jnp.dot(x_ref[...], w_ref[...], preferred_element_type=jnp.float32)
    q_ref[...] = jnp.maximum(acc + b_ref[...], 0.0)


def _linear_relu_gather_kernel(x_ref, w_ref, b_ref, a_ref, qa_ref):
    # Fused: q = relu(x @ W_t + b); q_acted[i] = q[i, action[i]]
    acc = jnp.dot(x_ref[...], w_ref[...], preferred_element_type=jnp.float32)
    q = jnp.maximum(acc + b_ref[...], 0.0)                       # [tm, n_out]
    col = jax.lax.broadcasted_iota(jnp.int32, q.shape, 1)        # lane indices
    onehot = (col == a_ref[...]).astype(jnp.float32)             # a_ref: [tm, 1] int32
    qa_ref[...] = jnp.sum(q * onehot, axis=-1, keepdims=True)    # [tm, 1]


def network_forward(state, w_t, b2d, action=None, batch_tile=None):
    """Forward pass of the DQN Network.

    state : [B, 1, n_in] or [B, n_in]; any dtype (cast to f32, matching .float()).
    w_t   : [n_in, n_out] float32  (pre-transposed torch Linear weight).
    b2d   : [1, n_out] float32.
    action: optional [B, 1] integer indices into the q vector.
    batch_tile: optional batch tile size; if set and B % batch_tile == 0, the batch
                is tiled across a parallel grid axis (useful for large B / v7x 2 TCs).
    """
    x = jnp.squeeze(state, axis=1) if state.ndim == 3 else state
    x = x.astype(jnp.float32)                     # the single .float() cast
    B, n_in = x.shape
    n_in_w, n_out = w_t.shape
    assert n_in == n_in_w, "weight / input feature mismatch"

    tiled = batch_tile is not None and B % batch_tile == 0
    parallel = pltpu.CompilerParams(dimension_semantics=("parallel",))

    if action is None:
        if not tiled:
            # Plain call: whole arrays as single VMEM blocks, no grid, no pipelining overhead.
            return pl.pallas_call(
                _linear_relu_kernel,
                out_shape=jax.ShapeDtypeStruct((B, n_out), jnp.float32),
            )(x, w_t, b2d)
        tm = batch_tile
        return pl.pallas_call(
            _linear_relu_kernel,
            out_shape=jax.ShapeDtypeStruct((B, n_out), jnp.float32),
            grid=(B // tm,),
            in_specs=[
                pl.BlockSpec((tm, n_in), lambda i: (i, 0)),
                pl.BlockSpec((n_in, n_out), lambda i: (0, 0)),   # weight resident
                pl.BlockSpec((1, n_out), lambda i: (0, 0)),      # bias resident
            ],
            out_specs=pl.BlockSpec((tm, n_out), lambda i: (i, 0)),
            compiler_params=parallel,
        )(x, w_t, b2d)

    a = action.astype(jnp.int32).reshape(B, 1)
    if not tiled:
        qa = pl.pallas_call(
            _linear_relu_gather_kernel,
            out_shape=jax.ShapeDtypeStruct((B, 1), jnp.float32),
        )(x, w_t, b2d, a)
    else:
        tm = batch_tile
        qa = pl.pallas_call(
            _linear_relu_gather_kernel,
            out_shape=jax.ShapeDtypeStruct((B, 1), jnp.float32),
            grid=(B // tm,),
            in_specs=[
                pl.BlockSpec((tm, n_in), lambda i: (i, 0)),
                pl.BlockSpec((n_in, n_out), lambda i: (0, 0)),
                pl.BlockSpec((1, n_out), lambda i: (0, 0)),
                pl.BlockSpec((tm, 1), lambda i: (i, 0)),
            ],
            out_specs=pl.BlockSpec((tm, 1), lambda i: (i, 0)),
            compiler_params=parallel,
        )(x, w_t, b2d, a)
    # torch.squeeze(): removes all size-1 dims (so B==1 yields a 0-d scalar, matching torch).
    return jnp.squeeze(qa)


def init_params(key, n_in, n_out):
    """xavier_uniform_(gain=sqrt(2)) weight + torch-default bias; returns MXU-friendly layout."""
    gain = jnp.sqrt(2.0)
    bound = gain * jnp.sqrt(6.0 / (n_in + n_out))
    kw, kb = jax.random.split(key)
    weight = jax.random.uniform(kw, (n_out, n_in), jnp.float32, -bound, bound)
    bb = 1.0 / jnp.sqrt(jnp.float32(n_in))
    bias = jax.random.uniform(kb, (n_out,), jnp.float32, -bb, bb)
    # One-time layout change OUTSIDE the hot path: [n_out, n_in] -> [n_in, n_out], bias -> [1, n_out].
    return jnp.asarray(weight.T), bias.reshape(1, n_out)


if __name__ == "__main__":
    key = jax.random.PRNGKey(0)
    k_state, k_action, k_params, k_state2, k_action2 = jax.random.split(key, 5)

    # Small shapes matching the module: input_shape=(..., 32), output_shape=(16,)
    B, n_in, n_out = 8, 32, 16
    state = jax.random.normal(k_state, (B, 1, n_in), jnp.float32)
    action = jax.random.randint(k_action, (B, 1), 0, n_out)
    w_t, b2d = init_params(k_params, n_in, n_out)

    # q-values path (action=None) and fused acted-q path.
    q = jax.block_until_ready(network_forward(state, w_t, b2d))
    qa = jax.block_until_ready(network_forward(state, w_t, b2d, action=action))

    # Reference (plain JAX).
    x_ref = jnp.squeeze(state, 1).astype(jnp.float32)
    q_ref = jnp.maximum(x_ref @ w_t + b2d, 0.0)
    qa_ref = jnp.squeeze(jnp.take_along_axis(q_ref, action, axis=1))
    assert jnp.allclose(q, q_ref, atol=1e-5), "q mismatch"
    assert jnp.allclose(qa, qa_ref, atol=1e-5), "q_acted mismatch"

    # Larger batch exercising the tiled / parallel-grid path (v7x 2-TC friendly).
    B2 = 256
    state2 = jax.random.normal(k_state2, (B2, 1, n_in), jnp.float32)
    action2 = jax.random.randint(k_action2, (B2, 1), 0, n_out)
    q2 = jax.block_until_ready(network_forward(state2, w_t, b2d, batch_tile=128))
    qa2 = jax.block_until_ready(
        network_forward(state2, w_t, b2d, action=action2, batch_tile=128)
    )
    x2 = jnp.squeeze(state2, 1)
    q2_ref = jnp.maximum(x2 @ w_t + b2d, 0.0)
    qa2_ref = jnp.squeeze(jnp.take_along_axis(q2_ref, action2, axis=1))
    assert jnp.allclose(q2, q2_ref, atol=1e-5), "tiled q mismatch"
    assert jnp.allclose(qa2, qa2_ref, atol=1e-5), "tiled q_acted mismatch"

    print("KERNEL_OK")
</pallas_src>

<mosaic_0001>
module attributes {stable_mosaic.version = 11 : i64} {
  func.func @_linear_relu_kernel(%arg0: memref<8x32xf32, #tpu.memory_space<vmem>>, %arg1: memref<32x16xf32, #tpu.memory_space<vmem>>, %arg2: memref<1x16xf32, #tpu.memory_space<vmem>>, %arg3: memref<8x16xf32, #tpu.memory_space<vmem>>) attributes {dimension_semantics = [], scalar_prefetch = 0 : i64, scratch_operands = 0 : i64, tpu.core_type = #tpu.core_type<tc>} {
    %c0 = arith.constant 0 : index
    %c0_0 = arith.constant 0 : index
    %0 = vector.load %arg0[%c0, %c0_0] : memref<8x32xf32, #tpu.memory_space<vmem>>, vector<8x32xf32>
    %c0_1 = arith.constant 0 : index
    %c0_2 = arith.constant 0 : index
    %1 = vector.load %arg1[%c0_1, %c0_2] : memref<32x16xf32, #tpu.memory_space<vmem>>, vector<32x16xf32>
    %cst = arith.constant dense<0.000000e+00> : vector<8x16xf32>
    %2 = tpu.matmul %0, %1, %cst {dimension_numbers = #tpu.dot_dimension_numbers<[1], [0], [0], [1], [0, 0, 1, 1], [], []>} : vector<8x32xf32>, vector<32x16xf32>, vector<8x16xf32> -> vector<8x16xf32>
    %c0_3 = arith.constant 0 : index
    %c0_4 = arith.constant 0 : index
    %3 = vector.load %arg2[%c0_3, %c0_4] : memref<1x16xf32, #tpu.memory_space<vmem>>, vector<1x16xf32>
    %4 = vector.broadcast %3 : vector<1x16xf32> to vector<8x16xf32>
    %5 = arith.addf %2, %4 : vector<8x16xf32>
    %cst_5 = arith.constant 0.000000e+00 : f32
    %6 = vector.broadcast %cst_5 : f32 to vector<8x16xf32>
    %7 = arith.maximumf %5, %6 : vector<8x16xf32>
    %c0_6 = arith.constant 0 : index
    %c0_7 = arith.constant 0 : index
    %8 = vector.load %arg3[%c0_6, %c0_7] : memref<8x16xf32, #tpu.memory_space<vmem>>, vector<8x16xf32>
    tpu.vector_store %arg3[%c0_6, %c0_7], %7 {strides = array<i32>} : memref<8x16xf32, #tpu.memory_space<vmem>>, vector<8x16xf32>,
    return
  }
}

</mosaic_0001>

<bundles_post_ra>
// kernel: tpu_custom_call.1
= control target key start
LH: loop header
LB: loop body
LE: loop exit
PB: predicated region body
PF: predicated region fallthrough
CT: control target
= control target key end

     0   :  { %s138_s0 = inlined_call_operand.vmem [shape: f32[8,32], index: 0, kind: input, shape index: {}]   ;;  %s139_s1 = inlined_call_operand.vmem [shape: f32[32,16], index: 1, kind: input, shape index: {}]   ;;  %s140_s2 = inlined_call_operand.vmem [shape: f32[1,16], index: 2, kind: input, shape index: {}]   ;;  %s141_s3 = inlined_call_operand.hbm [shape: f32[8,16], index: 3, kind: output, shape index: {}]  }
   0x1   :  { %v19_v0 = vld [vmem:[%s139_s1 + $0x18] sm:$0xff]  ;;  %v18_v1 = vld [vmem:[%s139_s1 + $0x10] sm:$0xff]  ;;  %v17_v2 = vld [vmem:[%s139_s1 + $0x8] sm:$0xff] }
   0x2   :  { %40 = vmatpush.msra.mxu0 %v19_v0 }
   0x3   :  { %8 = vsyncpa [#allocation3], 0  ;;  %v16_v3 = vld [vmem:[%s139_s1] sm:$0xff]  ;;  %vm24_vm0 = vcmask 261120   ;;  %s96_s24 = smov [#allocation2]   ;;  %s58_s28 = sshll.u32 %s141_s3, 4  ;;  %s59_s28 = int_to_ptr.hbm [resolvable:$true] %s58_s28 }
   0x4   :  { %41 = vmatpush.msra.mxu0 %v18_v1  ;;  %v15_v4 = vld [vmem:[%s138_s0] sm:$0xff]  ;;  %s56_s25 = sshll.u32 %s96_s24, 4  ;;  %vm49_vm1 = vcmask 130048   ;;  %s57_s25 = int_to_ptr.vmem [resolvable:$true] %s56_s25 }
   0x5   :  { %v69_v5 = vld [vmem:[%s140_s2] ss:$0 sm:$0xff] }
   0x6   :  { %42 = vmatpush.msra.mxu0 %v17_v2 }
   0x8   :  { %43 = vmatpush.msra.mxu0 %v16_v3 }
   0x9   :  { %67 = vmatmul.msk.f32.vlgmr.msra.gmra.mxu0 %vm24_vm0, %v15_v4 }
  0x86   :  { %v45_v6 = vpop.f32.mrf.mxu0 }
  0x87   :  { %v46_v7 = vadd.f32 %v69_v5, %v45_v6 }
  0x89   :  { %v48_v8 = vmax.f32 %v46_v7, 0.0 }
  0x8b   :  { %50 = vst.msk [vmem:[#allocation2] sm:$0xff] %vm49_vm1, %v48_v8 }
  0x8c   :  { %61 = dma.vmem_to_hbm [thread:$0]  %s57_s25, 128, %s59_s28, [#allocation3]  }
  0x8d   :  { %94 = dma.done.wait [#allocation3], 128  }
  0x8e   :  { %95 = vsyncadd [#allocation3], 4294967168 }
  0x8f   :  { %66 = vsyncpa [#allocation3], 1 }

</bundles_post_ra>
